<compile_context>
chip_gen: v7x
topology: tpu7x:2x2x1
jax: 0.10.0
libtpu: 0.0.40
codegen_flags: <defaults>
</compile_context>

<pallas_src>
import functools

import jax
import jax.numpy as jnp
from jax.experimental import pallas as pl
from jax.experimental.pallas import tpu as pltpu

EPS = 1e-5


# ----------------------------------------------------------------------------
# Kernel
# ----------------------------------------------------------------------------
def mlp_kernel(x_ref,
               w1_ref, sh1_ref,
               w2_ref, sh2_ref,
               w3_ref, sh3_ref,
               w4_ref, b4_ref,
               o_ref):
    # layer_1: (Linear * BN-scale) + folded shift + ReLU
    h = jnp.dot(x_ref[...], w1_ref[...], preferred_element_type=jnp.float32)
    h = jnp.maximum(h + sh1_ref[...], 0.0).astype(jnp.bfloat16)

    # layer_2: (Linear * BN-scale) + folded shift + ReLU
    h = jnp.dot(h, w2_ref[...], preferred_element_type=jnp.float32)
    h = jnp.maximum(h + sh2_ref[...], 0.0).astype(jnp.bfloat16)
    # TODO(synk): Dropout(p=0.2) is identity in eval mode; not applied here.

    # layer_3: (Linear * BN-scale) + folded shift + ReLU (width padded 64->128)
    h = jnp.dot(h, w3_ref[...], preferred_element_type=jnp.float32)
    h = jnp.maximum(h + sh3_ref[...], 0.0).astype(jnp.bfloat16)

    # layer_out: Linear only (classes padded to 128 lanes; zeros beyond C)
    out = jnp.dot(h, w4_ref[...], preferred_element_type=jnp.float32) + b4_ref[...]
    o_ref[...] = out.astype(o_ref.dtype)


# ----------------------------------------------------------------------------
# Wrapper / parameter preparation
# ----------------------------------------------------------------------------
def _round_up(x, m):
    return ((x + m - 1) // m) * m


def _pick_tb(batch):
    """Batch tile: multiple of 16 (bf16 packing), cap 512, >=2 grid steps when B>=32."""
    half = -(-batch // 2)                       # ceil(B/2)
    return min(512, _round_up(max(half, 16), 16))


def _fold_and_pad(params, c_pad):
    """Fold eval-mode BN into weights/shift, cast to bf16, lane-pad 64/C -> 128."""
    def scale_shift(b, g, be, rm, rv):
        sc = g * jax.lax.rsqrt(rv + EPS)
        sh = (b - rm) * sc + be
        return sc, sh

    sc1, sh1 = scale_shift(params["b1"], params["g1"], params["be1"],
                           params["rm1"], params["rv1"])
    sc2, sh2 = scale_shift(params["b2"], params["g2"], params["be2"],
                           params["rm2"], params["rv2"])
    sc3, sh3 = scale_shift(params["b3"], params["g3"], params["be3"],
                           params["rm3"], params["rv3"])

    w1 = (params["w1"] * sc1[None, :]).astype(jnp.bfloat16)
    w2 = (params["w2"] * sc2[None, :]).astype(jnp.bfloat16)

    # Pad layer-3 width 64 -> 128 (zero cols / zero shift) and C -> c_pad
    # (zero rows of w4 and zero bias) so padded lanes are exactly zero.
    h3, h3p = params["w3"].shape[1], 128
    w3 = jnp.pad(params["w3"] * sc3[None, :], ((0, 0), (0, h3p - h3)))
    sh3p = jnp.pad(sh3, (0, h3p - h3))
    c = params["w4"].shape[1]
    w4 = jnp.pad(params["w4"], ((0, h3p - h3), (0, c_pad - c)))
    b4 = jnp.pad(params["b4"], (0, c_pad - c))

    return (w1, sh1.reshape(1, -1).astype(jnp.float32),
            w2, sh2.reshape(1, -1).astype(jnp.float32),
            w3.astype(jnp.bfloat16), sh3p.reshape(1, -1).astype(jnp.float32),
            w4.astype(jnp.bfloat16), b4.reshape(1, -1).astype(jnp.float32))


@functools.partial(jax.jit, static_argnames=("tb",))
def _forward_impl(x, params, tb):
    B, F = x.shape
    C = params["w4"].shape[1]
    CP = _round_up(max(C, 128), 128)

    w1, sh1, w2, sh2, w3, sh3, w4, b4 = _fold_and_pad(params, CP)

    grid_b = pl.cdiv(B, tb)
    BP = grid_b * tb
    xp = x.astype(jnp.bfloat16)
    if BP != B:
        xp = jnp.pad(xp, ((0, BP - B), (0, 0)))

    def const2d(arr):
        # full-array block, replicated (same block index) across the batch axis
        # TODO(synk): for very large F, tile the K dim of w1 with a second
        # "arbitrary" grid axis instead of loading it whole (v7x 64 MiB VMEM).
        return pl.BlockSpec(arr.shape, lambda i: (0, 0))

    in_specs = [
        pl.BlockSpec((tb, F), lambda i: (i, 0)),   # x, tiled over batch
        const2d(w1), const2d(sh1),
        const2d(w2), const2d(sh2),
        const2d(w3), const2d(sh3),
        const2d(w4), const2d(b4),
    ]
    out_spec = pl.BlockSpec((tb, CP), lambda i: (i, 0))

    flops = 2 * BP * (F * 512 + 512 * 128 + 128 * 128 + 128 * CP)
    bytes_accessed = (xp.size * 2
                      + (w1.size + w2.size + w3.size + w4.size) * 2
                      + (sh1.size + sh2.size + sh3.size + b4.size) * 4
                      + BP * CP * 4)

    out = pl.pallas_call(
        mlp_kernel,
        out_shape=jax.ShapeDtypeStruct((BP, CP), jnp.float32),
        grid_spec=pltpu.PrefetchScalarGridSpec(
            num_scalar_prefetch=0,
            grid=(grid_b,),
            in_specs=in_specs,
            out_specs=out_spec,
        ),
        compiler_params=pltpu.CompilerParams(
            dimension_semantics=("parallel",),
            vmem_limit_bytes=48 * 1024 * 1024,
        ),
        cost_estimate=pl.CostEstimate(
            flops=flops, transcendentals=0, bytes_accessed=bytes_accessed),
    )(xp, w1, sh1, w2, sh2, w3, sh3, w4, b4)

    return out[:B, :C]


def multiclass_forward(x, params, tb=None):
    if tb is None:
        tb = _pick_tb(x.shape[0])
    return _forward_impl(x, params, tb)


# ----------------------------------------------------------------------------
# Test harness
# ----------------------------------------------------------------------------
def init_params(key, num_feature, num_class):
    dims = [(num_feature, 512), (512, 128), (128, 64), (64, num_class)]
    params = {}
    keys = jax.random.split(key, 8)
    for idx, (fin, fout) in enumerate(dims, start=1):
        kw, kb = keys[2 * (idx - 1)], keys[2 * (idx - 1) + 1]
        bound = 1.0 / jnp.sqrt(fin)
        params[f"w{idx}"] = jax.random.uniform(
            kw, (fin, fout), jnp.float32, -bound, bound)
        params[f"b{idx}"] = jax.random.uniform(
            kb, (fout,), jnp.float32, -bound, bound)
    # BatchNorm params (deterministic, non-trivial so the fold is exercised)
    for idx, n in zip((1, 2, 3), (512, 128, 64)):
        params[f"g{idx}"] = 1.0 + 0.01 * jnp.arange(n, dtype=jnp.float32) / n
        params[f"be{idx}"] = 0.05 * jnp.ones((n,), jnp.float32)
        params[f"rm{idx}"] = 0.01 * jnp.arange(n, dtype=jnp.float32) / n
        params[f"rv{idx}"] = 1.0 + 0.1 * jnp.arange(n, dtype=jnp.float32) / n
    return params


def reference_forward(x, params):
    def bn(h, g, be, rm, rv):
        return (h - rm) / jnp.sqrt(rv + EPS) * g + be

    h = x @ params["w1"] + params["b1"]
    h = jnp.maximum(bn(h, params["g1"], params["be1"], params["rm1"], params["rv1"]), 0.0)
    h = h @ params["w2"] + params["b2"]
    h = jnp.maximum(bn(h, params["g2"], params["be2"], params["rm2"], params["rv2"]), 0.0)
    h = h @ params["w3"] + params["b3"]
    h = jnp.maximum(bn(h, params["g3"], params["be3"], params["rm3"], params["rv3"]), 0.0)
    return h @ params["w4"] + params["b4"]


if __name__ == "__main__":
    B, F, C = 32, 32, 5
    key = jax.random.PRNGKey(0)
    kx, kp = jax.random.split(key)
    x = jax.random.normal(kx, (B, F), jnp.float32)
    params = init_params(kp, F, C)

    out = multiclass_forward(x, params)          # auto tb -> 16, grid of 2
    out = jax.block_until_ready(out)

    ref = reference_forward(x, params)           # full f32 reference
    assert out.shape == (B, C), f"bad shape {out.shape}"
    # bf16 weights/activations with f32 accumulation -> relaxed tolerance
    assert jnp.allclose(out, ref, atol=3e-2, rtol=3e-2), "mismatch vs JAX reference"
    print("KERNEL_OK")
</pallas_src>

<mosaic_0001>
module attributes {stable_mosaic.version = 11 : i64} {
  func.func @mlp_kernel(%arg0: i32, %arg1: memref<16x32xbf16, #tpu.memory_space<vmem>>, %arg2: memref<32x512xbf16, #tpu.memory_space<vmem>>, %arg3: memref<1x512xf32, #tpu.memory_space<vmem>>, %arg4: memref<512x128xbf16, #tpu.memory_space<vmem>>, %arg5: memref<1x128xf32, #tpu.memory_space<vmem>>, %arg6: memref<128x128xbf16, #tpu.memory_space<vmem>>, %arg7: memref<1x128xf32, #tpu.memory_space<vmem>>, %arg8: memref<128x128xbf16, #tpu.memory_space<vmem>>, %arg9: memref<1x128xf32, #tpu.memory_space<vmem>>, %arg10: memref<16x128xf32, #tpu.memory_space<vmem>>) attributes {dimension_semantics = [#tpu.dimension_semantics<parallel>], iteration_bounds = array<i64: 2>, scalar_prefetch = 0 : i64, scratch_operands = 0 : i64, tpu.core_type = #tpu.core_type<tc>, window_params = [{transform_indices = @transform_0, window_bounds = array<i64: 16, 32>}, {pipeline_mode = #tpu.pipeline_mode<synchronous>, transform_indices = @transform_1, window_bounds = array<i64: 32, 512>}, {pipeline_mode = #tpu.pipeline_mode<synchronous>, transform_indices = @transform_2, window_bounds = array<i64: 1, 512>}, {pipeline_mode = #tpu.pipeline_mode<synchronous>, transform_indices = @transform_3, window_bounds = array<i64: 512, 128>}, {pipeline_mode = #tpu.pipeline_mode<synchronous>, transform_indices = @transform_4, window_bounds = array<i64: 1, 128>}, {pipeline_mode = #tpu.pipeline_mode<synchronous>, transform_indices = @transform_5, window_bounds = array<i64: 128, 128>}, {pipeline_mode = #tpu.pipeline_mode<synchronous>, transform_indices = @transform_6, window_bounds = array<i64: 1, 128>}, {pipeline_mode = #tpu.pipeline_mode<synchronous>, transform_indices = @transform_7, window_bounds = array<i64: 128, 128>}, {pipeline_mode = #tpu.pipeline_mode<synchronous>, transform_indices = @transform_8, window_bounds = array<i64: 1, 128>}, {transform_indices = @transform_9, window_bounds = array<i64: 16, 128>}]} {
    %c0 = arith.constant 0 : index
    %c0_0 = arith.constant 0 : index
    %0 = vector.load %arg1[%c0, %c0_0] : memref<16x32xbf16, #tpu.memory_space<vmem>>, vector<16x32xbf16>
    %c0_1 = arith.constant 0 : index
    %c0_2 = arith.constant 0 : index
    %1 = vector.load %arg2[%c0_1, %c0_2] : memref<32x512xbf16, #tpu.memory_space<vmem>>, vector<32x512xbf16>
    %cst = arith.constant dense<0.000000e+00> : vector<16x512xf32>
    %2 = tpu.matmul %0, %1, %cst {dimension_numbers = #tpu.dot_dimension_numbers<[1], [0], [0], [1], [0, 0, 1, 1], [], []>} : vector<16x32xbf16>, vector<32x512xbf16>, vector<16x512xf32> -> vector<16x512xf32>
    %c0_3 = arith.constant 0 : index
    %c0_4 = arith.constant 0 : index
    %3 = vector.load %arg3[%c0_3, %c0_4] : memref<1x512xf32, #tpu.memory_space<vmem>>, vector<1x512xf32>
    %4 = vector.broadcast %3 : vector<1x512xf32> to vector<16x512xf32>
    %5 = arith.addf %2, %4 : vector<16x512xf32>
    %cst_5 = arith.constant 0.000000e+00 : f32
    %6 = vector.broadcast %cst_5 : f32 to vector<16x512xf32>
    %7 = arith.maximumf %5, %6 : vector<16x512xf32>
    %8 = arith.truncf %7 : vector<16x512xf32> to vector<16x512xbf16>
    %c0_6 = arith.constant 0 : index
    %c0_7 = arith.constant 0 : index
    %9 = vector.load %arg4[%c0_6, %c0_7] : memref<512x128xbf16, #tpu.memory_space<vmem>>, vector<512x128xbf16>
    %cst_8 = arith.constant dense<0.000000e+00> : vector<16x128xf32>
    %10 = tpu.matmul %8, %9, %cst_8 {dimension_numbers = #tpu.dot_dimension_numbers<[1], [0], [0], [1], [0, 0, 1, 1], [], []>} : vector<16x512xbf16>, vector<512x128xbf16>, vector<16x128xf32> -> vector<16x128xf32>
    %c0_9 = arith.constant 0 : index
    %c0_10 = arith.constant 0 : index
    %11 = vector.load %arg5[%c0_9, %c0_10] : memref<1x128xf32, #tpu.memory_space<vmem>>, vector<1x128xf32>
    %12 = vector.broadcast %11 : vector<1x128xf32> to vector<16x128xf32>
    %13 = arith.addf %10, %12 : vector<16x128xf32>
    %cst_11 = arith.constant 0.000000e+00 : f32
    %14 = vector.broadcast %cst_11 : f32 to vector<16x128xf32>
    %15 = arith.maximumf %13, %14 : vector<16x128xf32>
    %16 = arith.truncf %15 : vector<16x128xf32> to vector<16x128xbf16>
    %c0_12 = arith.constant 0 : index
    %c0_13 = arith.constant 0 : index
    %17 = vector.load %arg6[%c0_12, %c0_13] : memref<128x128xbf16, #tpu.memory_space<vmem>>, vector<128x128xbf16>
    %cst_14 = arith.constant dense<0.000000e+00> : vector<16x128xf32>
    %18 = tpu.matmul %16, %17, %cst_14 {dimension_numbers = #tpu.dot_dimension_numbers<[1], [0], [0], [1], [0, 0, 1, 1], [], []>} : vector<16x128xbf16>, vector<128x128xbf16>, vector<16x128xf32> -> vector<16x128xf32>
    %c0_15 = arith.constant 0 : index
    %c0_16 = arith.constant 0 : index
    %19 = vector.load %arg7[%c0_15, %c0_16] : memref<1x128xf32, #tpu.memory_space<vmem>>, vector<1x128xf32>
    %20 = vector.broadcast %19 : vector<1x128xf32> to vector<16x128xf32>
    %21 = arith.addf %18, %20 : vector<16x128xf32>
    %cst_17 = arith.constant 0.000000e+00 : f32
    %22 = vector.broadcast %cst_17 : f32 to vector<16x128xf32>
    %23 = arith.maximumf %21, %22 : vector<16x128xf32>
    %24 = arith.truncf %23 : vector<16x128xf32> to vector<16x128xbf16>
    %c0_18 = arith.constant 0 : index
    %c0_19 = arith.constant 0 : index
    %25 = vector.load %arg8[%c0_18, %c0_19] : memref<128x128xbf16, #tpu.memory_space<vmem>>, vector<128x128xbf16>
    %cst_20 = arith.constant dense<0.000000e+00> : vector<16x128xf32>
    %26 = tpu.matmul %24, %25, %cst_20 {dimension_numbers = #tpu.dot_dimension_numbers<[1], [0], [0], [1], [0, 0, 1, 1], [], []>} : vector<16x128xbf16>, vector<128x128xbf16>, vector<16x128xf32> -> vector<16x128xf32>
    %c0_21 = arith.constant 0 : index
    %c0_22 = arith.constant 0 : index
    %27 = vector.load %arg9[%c0_21, %c0_22] : memref<1x128xf32, #tpu.memory_space<vmem>>, vector<1x128xf32>
    %28 = vector.broadcast %27 : vector<1x128xf32> to vector<16x128xf32>
    %29 = arith.addf %26, %28 : vector<16x128xf32>
    %c0_23 = arith.constant 0 : index
    %c0_24 = arith.constant 0 : index
    %30 = vector.load %arg10[%c0_23, %c0_24] : memref<16x128xf32, #tpu.memory_space<vmem>>, vector<16x128xf32>
    tpu.vector_store %arg10[%c0_23, %c0_24], %29 {strides = array<i32>} : memref<16x128xf32, #tpu.memory_space<vmem>>, vector<16x128xf32>,
    return
  }
  func.func @transform_0(%arg0: i32) -> (i32, i32) {
    %c0_i32 = arith.constant 0 : i32
    %c0_i32_0 = arith.constant 0 : i32
    return %arg0, %c0_i32 : i32, i32
  }
  func.func @transform_1(%arg0: i32) -> (i32, i32) {
    %c0_i32 = arith.constant 0 : i32
    %c0_i32_0 = arith.constant 0 : i32
    %c0_i32_1 = arith.constant 0 : i32
    return %c0_i32, %c0_i32_0 : i32, i32
  }
  func.func @transform_2(%arg0: i32) -> (i32, i32) {
    %c0_i32 = arith.constant 0 : i32
    %c0_i32_0 = arith.constant 0 : i32
    %c0_i32_1 = arith.constant 0 : i32
    return %c0_i32, %c0_i32_0 : i32, i32
  }
  func.func @transform_3(%arg0: i32) -> (i32, i32) {
    %c0_i32 = arith.constant 0 : i32
    %c0_i32_0 = arith.constant 0 : i32
    %c0_i32_1 = arith.constant 0 : i32
    return %c0_i32, %c0_i32_0 : i32, i32
  }
  func.func @transform_4(%arg0: i32) -> (i32, i32) {
    %c0_i32 = arith.constant 0 : i32
    %c0_i32_0 = arith.constant 0 : i32
    %c0_i32_1 = arith.constant 0 : i32
    return %c0_i32, %c0_i32_0 : i32, i32
  }
  func.func @transform_5(%arg0: i32) -> (i32, i32) {
    %c0_i32 = arith.constant 0 : i32
    %c0_i32_0 = arith.constant 0 : i32
    %c0_i32_1 = arith.constant 0 : i32
    return %c0_i32, %c0_i32_0 : i32, i32
  }
  func.func @transform_6(%arg0: i32) -> (i32, i32) {
    %c0_i32 = arith.constant 0 : i32
    %c0_i32_0 = arith.constant 0 : i32
    %c0_i32_1 = arith.constant 0 : i32
    return %c0_i32, %c0_i32_0 : i32, i32
  }
  func.func @transform_7(%arg0: i32) -> (i32, i32) {
    %c0_i32 = arith.constant 0 : i32
    %c0_i32_0 = arith.constant 0 : i32
    %c0_i32_1 = arith.constant 0 : i32
    return %c0_i32, %c0_i32_0 : i32, i32
  }
  func.func @transform_8(%arg0: i32) -> (i32, i32) {
    %c0_i32 = arith.constant 0 : i32
    %c0_i32_0 = arith.constant 0 : i32
    %c0_i32_1 = arith.constant 0 : i32
    return %c0_i32, %c0_i32_0 : i32, i32
  }
  func.func @transform_9(%arg0: i32) -> (i32, i32) {
    %c0_i32 = arith.constant 0 : i32
    %c0_i32_0 = arith.constant 0 : i32
    return %arg0, %c0_i32 : i32, i32
  }
}

</mosaic_0001>

<bundles_post_ra>
// kernel: _forward_impl.1
= control target key start
LH: loop header
LB: loop body
LE: loop exit
PB: predicated region body
PF: predicated region fallthrough
CT: control target
= control target key end

     0   :  { %s1457_s30 = smov 0   ;;  %s1676_s0 = inlined_call_operand.vmem [shape: bf16[32,32], index: 0, kind: input, shape index: {}]   ;;  %s1677_s1 = inlined_call_operand.vmem [shape: bf16[32,512], index: 1, kind: input, shape index: {}]   ;;  %s1678_s2 = inlined_call_operand.vmem [shape: f32[1,512], index: 2, kind: input, shape index: {}]   ;;  %s1679_s3 = inlined_call_operand.vmem [shape: bf16[512,128], index: 3, kind: input, shape index: {}]   ;;  %s1680_s4 = inlined_call_operand.vmem [shape: f32[1,128], index: 4, kind: input, shape index: {}]   ;;  %s1681_s5 = inlined_call_operand.vmem [shape: bf16[128,128], index: 5, kind: input, shape index: {}]   ;;  %s1682_s6 = inlined_call_operand.vmem [shape: f32[1,128], index: 6, kind: input, shape index: {}]   ;;  %s1683_s7 = inlined_call_operand.vmem [shape: bf16[128,128], index: 7, kind: input, shape index: {}]   ;;  %s1684_s8 = inlined_call_operand.vmem [shape: f32[1,128], index: 8, kind: input, shape index: {}]   ;;  %s1685_s9 = inlined_call_operand.vmem [shape: f32[32,128], index: 9, kind: output, shape index: {}]  }
   0x1 LB: > { %s1149_s10 = sadd.s32 4294967295, %s1402_s30   ;;  %p1153_p0 = scmp.ge.s32.totalorder %s1402_s30, 1  ;;  %s1402_s30 = sphi %s1457_s30, %s19_s30  }
   0x2   : > { %p288_p1 = scmp.lt.s32.totalorder %s1402_s30, 3 }
   0x4   : > { %p289_p2 = pnand %p1153_p0, %p288_p1 }
   0x5   : > { %v1335_v0 = vld [vmem:[%s1677_s1 + $0x4] ss:$16 sps:$4 sm:$0xff] (!%p289_p2)   ;;  %s1154_s13 = sshll.u32 (!%p289_p2), %s1149_s10, 1  ;;  %v1337_v1 = vld [vmem:[%s1677_s1 + $0xc] ss:$16 sps:$4 sm:$0xff] (!%p289_p2)   ;;  %v1404_v2 = vmov (!%p289_p2), 0   ;;  %v349_v43 = vlaneseq (!%p289_p2) }
   0x6   : > { %292 = sbr.rel (%p289_p2) target bundleno = 901 (0x385), region = 56  ;;  %450 = vmatprep.mubr.bf16.mxu0 (!%p289_p2), %v1404_v2  ;;  %493 = vmatprep.mubr.bf16.mxu1 (!%p289_p2), %v1404_v2  ;;  %p325_p3 = scmp.lt.s32.totalorder (!%p289_p2), %s1154_s13, 3  ;;  %v1339_v3 = vld [vmem:[%s1677_s1] ss:$16 sps:$4 sm:$0xff] (!%p289_p2)   ;;  %v1340_v4 = vld [vmem:[%s1677_s1 + $0x8] ss:$16 sps:$4 sm:$0xff] (!%p289_p2)  }
   0x7   : > { %418 = vmatprep.subr.bf16.mxu0 (!%p289_p2), %v1335_v0  ;;  %461 = vmatprep.subr.bf16.mxu1 (!%p289_p2), %v1337_v1  ;;  %v1341_v5 = vld [vmem:[%s1677_s1 + $0x24] ss:$16 sps:$4 sm:$0xff] (!%p289_p2)   ;;  %v1343_v6 = vld [vmem:[%s1677_s1 + $0x2c] ss:$16 sps:$4 sm:$0xff] (!%p289_p2)   ;;  %v1345_v7 = vld [vmem:[%s1677_s1 + $0x20] ss:$16 sps:$4 sm:$0xff] (!%p289_p2)  }
   0x8   : > { %419 = vmatpush1.bf16.msra.mxu0 (!%p289_p2), %v1339_v3  ;;  %462 = vmatpush1.bf16.msra.mxu1 (!%p289_p2), %v1340_v4  ;;  %v1346_v8 = vld [vmem:[%s1677_s1 + $0x28] ss:$16 sps:$4 sm:$0xff] (!%p289_p2)   ;;  %v1348_v9 = vld [vmem:[%s1679_s3 + $0x40] sm:$0xff] (!%p289_p2)   ;;  %vm414_vm0 = vcmask (!%p289_p2), 261120   ;;  %v1356_v18 = vld [vmem:[%s1679_s3 + $0x50] sm:$0xff] (!%p289_p2)   ;;  %v1405_v42 = vmov (!%p289_p2), 0.0  }
   0x9   : > { %420 = vmatprep.subr.bf16.mxu0 (!%p289_p2), %v1341_v5  ;;  %463 = vmatprep.subr.bf16.mxu1 (!%p289_p2), %v1343_v6  ;;  %v1349_v11 = vld [vmem:[%s1679_s3 + $0xc0] sm:$0xff] (!%p289_p2)   ;;  %v1352_v14 = vld [vmem:[%s1679_s3 + $0x48] sm:$0xff] (!%p289_p2)   ;;  %v1357_v19 = vld [vmem:[%s1679_s3 + $0xd0] sm:$0xff] (!%p289_p2)   ;;  %v350_v44 = vshrl.u32 (!%p289_p2), %v349_v43, 7  ;;  %vm1406_vm1 = vmmov (!%p289_p2), 0  }
   0xa   : > { %v1350_v12 = vld [vmem:[%s1679_s3] sm:$0xff] (!%p289_p2)   ;;  %v1353_v15 = vld [vmem:[%s1679_s3 + $0xc8] sm:$0xff] (!%p289_p2)   ;;  %v1358_v20 = vld [vmem:[%s1679_s3 + $0x10] sm:$0xff] (!%p289_p2)  }
   0xb   : > { %v1351_v13 = vld [vmem:[%s1679_s3 + $0x80] sm:$0xff] (!%p289_p2)   ;;  %v1354_v16 = vld [vmem:[%s1679_s3 + $0x8] sm:$0xff] (!%p289_p2)   ;;  %v1359_v21 = vld [vmem:[%s1679_s3 + $0x90] sm:$0xff] (!%p289_p2)   ;;  %v351_v45 = vsub.s32 (!%p289_p2), 0, %v350_v44  ;;  %v359_v46 = vsub.s32 (!%p289_p2), 2, %v350_v44  ;;  %v355_v48 = vsub.s32 (!%p289_p2), 1, %v350_v44 }
   0xc   : > { %421 = vmatpush1.bf16.msra.mxu0 (!%p289_p2), %v1345_v7  ;;  %464 = vmatpush1.bf16.msra.mxu1 (!%p289_p2), %v1346_v8  ;;  %v1355_v17 = vld [vmem:[%s1679_s3 + $0x88] sm:$0xff] (!%p289_p2)   ;;  %v1360_v22 = vld [vmem:[%s1679_s3 + $0x58] sm:$0xff] (!%p289_p2)   ;;  %v1364_v26 = vld [vmem:[%s1679_s3 + $0x60] sm:$0xff] (!%p289_p2)   ;;  %v363_v49 = vsub.s32 (!%p289_p2), 3, %v350_v44 }
   0xd   : > { %s1687_s13 = smov (!%p325_p3, %s1154_s13), 3  ;;  %1222 = vmatprep.subr.bf16.mxu0 %v1348_v9  ;;  %1244 = vmatprep.subr.bf16.mxu1 %v1349_v11  ;;  %v1361_v23 = vld [vmem:[%s1679_s3 + $0xd8] sm:$0xff]   ;;  %v1365_v27 = vld [vmem:[%s1679_s3 + $0xe0] sm:$0xff]   ;;  %v1368_v30 = vld [vmem:[%s1679_s3 + $0x68] sm:$0xff]  }
   0xe   : > { %s1155_s28 = sshll.u32 %s1687_s13, 2  ;;  %v1362_v24 = vld [vmem:[%s1679_s3 + $0x18] sm:$0xff]   ;;  %v1366_v28 = vld [vmem:[%s1679_s3 + $0x20] sm:$0xff]   ;;  %v1369_v31 = vld [vmem:[%s1679_s3 + $0xe8] sm:$0xff]   ;;  %s1157_s20 = sshll.u32 %s1687_s13, 3 }
   0xf   : > { %s328_s14 = scalar_lea.vmem %s1676_s0, %s1155_s28  ;;  %v1363_v25 = vld [vmem:[%s1679_s3 + $0x98] sm:$0xff]   ;;  %v1367_v29 = vld [vmem:[%s1679_s3 + $0xa0] sm:$0xff]   ;;  %v1370_v32 = vld [vmem:[%s1679_s3 + $0x28] sm:$0xff]   ;;  %s334_s25 = scalar_lea.vmem %s1685_s9, %s1157_s20 }
  0x10   : > { %v1347_v10 = vld [vmem:[%s328_s14] sm:$0xff]   ;;  %v1371_v33 = vld [vmem:[%s1679_s3 + $0xa8] sm:$0xff]   ;;  %v1372_v34 = vld [vmem:[%s1679_s3 + $0x70] sm:$0xff]  }
  0x11   : > { %1167 = vmatmul.mubr.msk.bf16.vlgmr.msra.gmra.mrb[0].mxu0 %vm414_vm0, %v1347_v10  ;;  %1168 = vmatmul.mubr.msk.bf16.vlgmr.msra.gmra.mrb[0].mxu1 %vm414_vm0, %v1347_v10  ;;  %v1373_v35 = vld [vmem:[%s1679_s3 + $0xf0] sm:$0xff]   ;;  %v1376_v38 = vld [vmem:[%s1679_s3 + $0x78] sm:$0xff]   ;;  %v347_v47 = vld [vmem:[%s1678_s2] sm:$0xf] }
  0x12   : > { %1223 = vmatpush3.bf16.msra.mxu0 %v1350_v12  ;;  %1245 = vmatpush3.bf16.msra.mxu1 %v1351_v13  ;;  %v1374_v36 = vld [vmem:[%s1679_s3 + $0x30] sm:$0xff]   ;;  %v1377_v39 = vld [vmem:[%s1679_s3 + $0xf8] sm:$0xff]   ;;  %v352_v50 = vrot.slane %v347_v47, %v351_v45  ;;  %v360_v51 = vrot.slane %v347_v47, %v359_v46  ;;  %v356_v52 = vrot.slane %v347_v47, %v355_v48 }
  0x13   : > { %1224 = vmatprep.subr.bf16.mxu0 %v1352_v14  ;;  %1246 = vmatprep.subr.bf16.mxu1 %v1353_v15  ;;  %v1375_v37 = vld [vmem:[%s1679_s3 + $0xb0] sm:$0xff]   ;;  %v1378_v40 = vld [vmem:[%s1679_s3 + $0x38] sm:$0xff]   ;;  %v364_v53 = vrot.slane %v347_v47, %v363_v49 }
  0x14   : > { %v1379_v41 = vld [vmem:[%s1679_s3 + $0xb8] sm:$0xff]  }
  0x16   : > { %1225 = vmatpush3.bf16.msra.mxu0 %v1354_v16  ;;  %1247 = vmatpush3.bf16.msra.mxu1 %v1355_v17 }
  0x17   : > { %1226 = vmatprep.subr.bf16.mxu0 %v1356_v18  ;;  %1248 = vmatprep.subr.bf16.mxu1 %v1357_v19  ;;  %v1380_v18 = vld [vmem:[%s1681_s5] sm:$0xff]   ;;  %v1381_v19 = vld [vmem:[%s1681_s5 + $0x8] sm:$0xff]  }
  0x1a   : > { %1227 = vmatpush3.bf16.msra.mxu0 %v1358_v20  ;;  %1249 = vmatpush3.bf16.msra.mxu1 %v1359_v21  ;;  %v1382_v20 = vld [vmem:[%s1681_s5 + $0x10] sm:$0xff]   ;;  %v1383_v21 = vld [vmem:[%s1681_s5 + $0x18] sm:$0xff]  }
  0x1b   : > { %1228 = vmatprep.subr.bf16.mxu0 %v1360_v22  ;;  %1250 = vmatprep.subr.bf16.mxu1 %v1361_v23  ;;  %v1384_v22 = vld [vmem:[%s1681_s5 + $0x20] sm:$0xff]   ;;  %v1385_v23 = vld [vmem:[%s1681_s5 + $0x28] sm:$0xff]  }
  0x1e   : > { %1229 = vmatpush3.bf16.msra.mxu0 %v1362_v24  ;;  %1251 = vmatpush3.bf16.msra.mxu1 %v1363_v25  ;;  %v1386_v24 = vld [vmem:[%s1681_s5 + $0x30] sm:$0xff]   ;;  %v1387_v25 = vld [vmem:[%s1681_s5 + $0x38] sm:$0xff]  }
  0x1f   : > { %1230 = vmatprep.subr.bf16.mxu0 %v1364_v26  ;;  %1252 = vmatprep.subr.bf16.mxu1 %v1365_v27  ;;  %v1388_v26 = vld [vmem:[%s1683_s7] sm:$0xff]   ;;  %v1389_v27 = vld [vmem:[%s1683_s7 + $0x8] sm:$0xff]  }
  0x22   : > { %1231 = vmatpush3.bf16.msra.mxu0 %v1366_v28  ;;  %1253 = vmatpush3.bf16.msra.mxu1 %v1367_v29  ;;  %v1390_v28 = vld [vmem:[%s1683_s7 + $0x10] sm:$0xff]   ;;  %v1391_v29 = vld [vmem:[%s1683_s7 + $0x18] sm:$0xff]  }
  0x23   : > { %1232 = vmatprep.subr.bf16.mxu0 %v1368_v30  ;;  %1254 = vmatprep.subr.bf16.mxu1 %v1369_v31  ;;  %v1392_v30 = vld [vmem:[%s1683_s7 + $0x20] sm:$0xff]   ;;  %v1393_v31 = vld [vmem:[%s1683_s7 + $0x28] sm:$0xff]  }
  0x26   : > { %1233 = vmatpush3.bf16.msra.mxu0 %v1370_v32  ;;  %1255 = vmatpush3.bf16.msra.mxu1 %v1371_v33 }
  0x27   : > { %1234 = vmatprep.subr.bf16.mxu0 %v1372_v34  ;;  %1256 = vmatprep.subr.bf16.mxu1 %v1373_v35  ;;  %v1169_v34 = vld [vmem:[%s1680_s4] ss:$0 sm:$0xff] }
  0x2a   : > { %1235 = vmatpush3.bf16.msra.mxu0 %v1374_v36  ;;  %1257 = vmatpush3.bf16.msra.mxu1 %v1375_v37 }
  0x2b   : > { %1236 = vmatprep.subr.bf16.mxu0 %v1376_v38  ;;  %1258 = vmatprep.subr.bf16.mxu1 %v1377_v39 }
  0x2e   : > { %1237 = vmatpush3.bf16.msra.mxu0 %v1378_v40  ;;  %1259 = vmatpush3.bf16.msra.mxu1 %v1379_v41 }
  0x2f   : > { %1284 = vmatprep.subr.bf16.mxu0 %v1405_v42  ;;  %1304 = vmatprep.subr.bf16.mxu1 %v1405_v42 }
  0xe4   : > { %v452_v54 = vpop.f32.mrb[0].mxu0  ;;  %v495_v55 = vpop.f32.mrb[0].mxu1 }
  0xe5   : > { %v453_v56 = vadd.f32 %v452_v54, %v352_v50  ;;  %v496_v57 = vadd.f32 %v495_v55, %v360_v51  ;;  %v454_v58 = vpop.f32.mrb[1].mxu0  ;;  %v497_v59 = vpop.f32.mrb[1].mxu1  ;;  %v1395_v54 = vld [vmem:[%s1683_s7 + $0x38] sm:$0xff]   ;;  %v1202_v55 = vld [vmem:[%s1682_s6] ss:$0 sm:$0xff] }
  0xe6   : > { %v455_v60 = vadd.f32 %v454_v58, %v356_v52  ;;  %v498_v61 = vadd.f32 %v497_v59, %v364_v53  ;;  %v456_v62 = vpop.f32.mrb[2].mxu0  ;;  %v499_v63 = vpop.f32.mrb[2].mxu1 }
  0xe7   : > { %v506_v0 = vmax.f32 %v496_v57, 0.0  ;;  %v457_v1 = vadd.f32 %v456_v62, %v352_v50  ;;  %v500_v2 = vadd.f32 %v499_v63, %v360_v51  ;;  %v458_v3 = vpop.f32.mrb[3].mxu0  ;;  %v501_v4 = vpop.f32.mrb[3].mxu1  ;;  %v504_v8 = vmax.f32 %v453_v56, 0.0 }
  0xe8   : > { %v507_v5 = vmax.f32 %v498_v61, 0.0  ;;  %v459_v6 = vadd.f32 %v458_v3, %v356_v52  ;;  %v502_v7 = vadd.f32 %v501_v4, %v364_v53  ;;  %v505_v11 = vmax.f32 %v455_v60, 0.0  ;;  %v1394_v53 = vld [vmem:[%s1683_s7 + $0x30] sm:$0xff]  }
  0xe9   : > { %v508_v9 = vmax.f32 %v457_v1, 0.0  ;;  %v510_v10 = vmax.f32 %v500_v2, 0.0 }
  0xea   : > { %v509_v12 = vmax.f32 %v459_v6, 0.0  ;;  %v511_v13 = vmax.f32 %v502_v7, 0.0 }
  0xeb   : > { %v512_v14 = vpack.c.bf16 %v508_v9, %v504_v8  ;;  %v514_v15 = vpack.c.bf16 %v510_v10, %v506_v0 }
  0xec   : > { %v513_v16 = vpack.c.bf16 %v509_v12, %v505_v11  ;;  %v515_v17 = vpack.c.bf16 %v511_v13, %v507_v5 }
  0xee   : > { %811 = vmatprep.mubr.bf16.mxu0 %v513_v16  ;;  %852 = vmatprep.mubr.bf16.mxu1 %v515_v17 }
  0xef   : > { %812 = vmatmul.mubr.bf16.vlgmr.msra.gmra.mrb[4].mxu0 %v512_v14  ;;  %853 = vmatmul.mubr.bf16.vlgmr.msra.gmra.mrb[4].mxu1 %v514_v15 }
  0xf0   : > { %1285 = vmatpush3.bf16.msra.mxu0 %v1380_v18  ;;  %1300 = vmatprep.mubr.msk.bf16.mxu0 %vm1406_vm1, %v1405_v42 }
  0xf1   : > { %1286 = vmatprep.subr.bf16.mxu0 %v1405_v42  ;;  %1320 = vmatprep.mubr.msk.bf16.mxu1 %vm1406_vm1, %v1405_v42 }
  0xf2   : > { %1305 = vmatpush3.bf16.msra.mxu1 %v1388_v26 }
  0xf3   : > { %1306 = vmatprep.subr.bf16.mxu1 %v1405_v42 }
  0xf4   : > { %1287 = vmatpush3.bf16.msra.mxu0 %v1381_v19 }
  0xf5   : > { %1288 = vmatprep.subr.bf16.mxu0 %v1405_v42 }
  0xf6   : > { %1307 = vmatpush3.bf16.msra.mxu1 %v1389_v27 }
  0xf7   : > { %1308 = vmatprep.subr.bf16.mxu1 %v1405_v42 }
  0xf8   : > { %1289 = vmatpush3.bf16.msra.mxu0 %v1382_v20 }
  0xf9   : > { %1290 = vmatprep.subr.bf16.mxu0 %v1405_v42 }
  0xfa   : > { %1309 = vmatpush3.bf16.msra.mxu1 %v1390_v28 }
  0xfb   : > { %1310 = vmatprep.subr.bf16.mxu1 %v1405_v42 }
  0xfc   : > { %1291 = vmatpush3.bf16.msra.mxu0 %v1383_v21 }
  0xfd   : > { %1292 = vmatprep.subr.bf16.mxu0 %v1405_v42 }
  0xfe   : > { %1311 = vmatpush3.bf16.msra.mxu1 %v1391_v29 }
  0xff   : > { %1312 = vmatprep.subr.bf16.mxu1 %v1405_v42 }
 0x100   : > { %1293 = vmatpush3.bf16.msra.mxu0 %v1384_v22 }
 0x101   : > { %1294 = vmatprep.subr.bf16.mxu0 %v1405_v42 }
 0x102   : > { %1313 = vmatpush3.bf16.msra.mxu1 %v1392_v30 }
 0x103   : > { %1314 = vmatprep.subr.bf16.mxu1 %v1405_v42 }
 0x104   : > { %1295 = vmatpush3.bf16.msra.mxu0 %v1385_v23 }
 0x105   : > { %1296 = vmatprep.subr.bf16.mxu0 %v1405_v42 }
 0x106   : > { %1315 = vmatpush3.bf16.msra.mxu1 %v1393_v31 }
 0x107   : > { %1316 = vmatprep.subr.bf16.mxu1 %v1405_v42 }
 0x108   : > { %1297 = vmatpush3.bf16.msra.mxu0 %v1386_v24 }
 0x109   : > { %1298 = vmatprep.subr.bf16.mxu0 %v1405_v42 }
 0x10a   : > { %1317 = vmatpush3.bf16.msra.mxu1 %v1394_v53 }
 0x10b   : > { %1318 = vmatprep.subr.bf16.mxu1 %v1405_v42  ;;  %v1211_v42 = vld [vmem:[%s1684_s8] ss:$0 sm:$0xff] }
 0x10c   : > { %1299 = vmatpush3.bf16.msra.mxu0 %v1387_v25 }
 0x10e   : > { %1319 = vmatpush3.bf16.msra.mxu1 %v1395_v54 }
 0x1c2   : > { %v1238_v32 = vpop.f32.mrb[4].mxu0  ;;  %v1260_v33 = vpop.f32.mrb[4].mxu1 }
 0x1c3   : > { %v1239_v35 = vpop.f32.mrb[5].mxu0  ;;  %v1261_v36 = vpop.f32.mrb[5].mxu1 }
 0x1c4   : > { %v1240_v37 = vadd.f32 %v1239_v35, %v1238_v32  ;;  %v1262_v38 = vadd.f32 %v1261_v36, %v1260_v33  ;;  %v1241_v39 = vpop.f32.mrb[6].mxu0  ;;  %v1263_v40 = vpop.f32.mrb[6].mxu1 }
 0x1c5   : > { %v1242_v41 = vpop.f32.mrb[7].mxu0  ;;  %v1264_v43 = vpop.f32.mrb[7].mxu1 }
 0x1c6   : > { %v814_v44 = vadd.f32 %v1240_v37, %v1169_v34  ;;  %v1243_v45 = vadd.f32 %v1242_v41, %v1241_v39  ;;  %v1265_v46 = vadd.f32 %v1264_v43, %v1263_v40 }
 0x1c8   : > { %v855_v47 = vadd.f32 %v1262_v38, %v814_v44  ;;  %v817_v48 = vadd.f32 %v1243_v45, %v1169_v34 }
 0x1ca   : > { %v858_v49 = vadd.f32 %v1265_v46, %v817_v48  ;;  %v861_v50 = vmax.f32 %v855_v47, 0.0 }
 0x1cc   : > { %v862_v51 = vmax.f32 %v858_v49, 0.0 }
 0x1ce   : > { %v863_v52 = vpack.c.bf16 %v862_v51, %v861_v50 }
 0x1d0   : > { %1301 = vmatmul.mubr.bf16.vlgmr.msra.gmra.mrb[8].mxu0 %v863_v52 }
 0x2a3   : > { %v969_v56 = vpop.f32.mrb[8].mxu0 }
 0x2a4   : > { %v970_v57 = vadd.f32 %v1202_v55, %v969_v56  ;;  %v1302_v58 = vpop.f32.mrb[9].mxu0 }
 0x2a5   : > { %v972_v59 = vpop.f32.mrb[10].mxu0 }
 0x2a6   : > { %v973_v60 = vadd.f32 %v1202_v55, %v972_v59  ;;  %v1303_v61 = vpop.f32.mrb[11].mxu0  ;;  %v976_v62 = vmax.f32 %v970_v57, 0.0 }
 0x2a8   : > { %v977_v63 = vmax.f32 %v973_v60, 0.0 }
 0x2aa   : > { %v978_v0 = vpack.c.bf16 %v977_v63, %v976_v62 }
 0x2ac   : > { %1321 = vmatmul.mubr.bf16.vlgmr.msra.gmra.mrb[8].mxu1 %v978_v0 }
 0x37f   : > { %v1084_v1 = vpop.f32.mrb[8].mxu1 }
 0x380   : > { %v1085_v2 = vadd.f32 %v1211_v42, %v1084_v1  ;;  %v1322_v3 = vpop.f32.mrb[9].mxu1 }
 0x381   : > { %v1087_v4 = vpop.f32.mrb[10].mxu1 }
 0x382   : > { %1091 = vst [vmem:[%s334_s25] sm:$0xff] %v1085_v2  ;;  %v1088_v5 = vadd.f32 %v1211_v42, %v1087_v4  ;;  %v1323_v6 = vpop.f32.mrb[11].mxu1 }
 0x384   : > { %1092 = vst [vmem:[%s334_s25 + $0x8] sm:$0xff] %v1088_v5 }
 0x385 PF: > { %s19_s30 = sadd.s32 1, %s1402_s30  }
 0x386   : > { %p16_p4 = scmp.ge.s32.totalorder %s19_s30, 4  }
 0x388   :  { %18 = sbr.rel (!%p16_p4) target bundleno = 1 (0x1), region = 86 }

</bundles_post_ra>
